<compile_context>
chip_gen: v5e
topology: v5e:2x2
jax: 0.10.0
libtpu: 0.0.40
codegen_flags: <defaults>
</compile_context>

<pallas_src>
from functools import partial

import jax
import jax.numpy as jnp
from jax.experimental import pallas as pl
from jax.experimental.pallas import tpu as pltpu


def cm_net_kernel(x_ref, w_enc_ref, b_enc_ref,
                  w_mv_ref, b_mv_ref,
                  eps_ref, w_dec_ref, b_dec_ref,
                  cm_ref, stats_ref, *, bf16_softplus):
    L = eps_ref.shape[-1]                                    # latent dim (static)
    bf = jnp.bfloat16

    # --- encoder: relu(x @ W_enc + b_enc) -------------------------------------
    # x arrives as f32; cast the VMEM tile to bf16 here (no extra HBM pass),
    # accumulate in f32 on the MXU.
    h = jnp.dot(x_ref[...].astype(bf), w_enc_ref[...],
                preferred_element_type=jnp.float32)          # (TB, L//2) f32
    h = jnp.maximum(h + b_enc_ref[...], 0.0)

    # --- fused mu / log_var heads: single (L//2, 2L) matmul, bf16 operands ----
    stats = jnp.dot(h.astype(bf), w_mv_ref[...],
                    preferred_element_type=jnp.float32) + b_mv_ref[...]  # (TB, 2L)
    mu = stats[:, :L]
    log_var = stats[:, L:]

    # --- reparameterization: z = eps * exp(0.5*log_var) + mu ------------------
    z = eps_ref[...] * jnp.exp(0.5 * log_var) + mu           # (TB, L) f32

    # --- decoder: softplus(z @ W_dec + b_dec) ---------------------------------
    dec = jnp.dot(z.astype(bf), w_dec_ref[...],
                  preferred_element_type=jnp.float32) + b_dec_ref[...]   # (TB, D_out)

    # numerically stable softplus: max(x,0) + log1p(exp(-|x|))
    if bf16_softplus:
        # v6e/v7x: bf16 EUP path (gated behind a flag; changes numerics slightly)
        d = dec.astype(bf)
        sp = jnp.maximum(d, 0.0) + jnp.log1p(jnp.exp(-jnp.abs(d)))
    else:
        # default / v5e: f32 EUP (no bf16 EUP on v5e), exact module semantics
        sp = jnp.maximum(dec, 0.0) + jnp.log1p(jnp.exp(-jnp.abs(dec)))

    cm_ref[...] = sp.astype(cm_ref.dtype)
    stats_ref[...] = stats


def _choose_batch_tile(B, tb_max, min_steps=2):
    """Batch tile: multiple of 8 (or == B), >= min_steps grid steps when the
    batch is large enough (v7x megacore + pipelining), capped at tb_max."""
    if B <= max(16, 8 * min_steps):
        return B                                   # single block; tb == full dim
    tb = -(-B // min_steps)                        # cdiv(B, min_steps)
    tb = ((tb + 7) // 8) * 8                       # round up to a multiple of 8
    tb = min(tb, tb_max, ((B + 7) // 8) * 8)
    return max(tb, 8)


def cm_net_forward(x_nchw, params, eps, *, tb_max=512, min_steps=2,
                   bf16_softplus=False, cm_dtype=jnp.float32,
                   vmem_limit_bytes=32 * 1024 * 1024):
    """x_nchw: (B, C, H, W) float32. params: dict of weights. eps: (B, latent)."""
    B = x_nchw.shape[0]
    # torch.flatten(x, start_dim=1) -- free reshape; keep f32 (cast in-kernel).
    x_flat = x_nchw.reshape(B, -1)

    D_in = x_flat.shape[1]
    L2 = params["w_enc"].shape[1]
    L = params["w_mu"].shape[1]
    D_out = params["w_dec"].shape[1]

    bf = jnp.bfloat16
    w_enc = params["w_enc"].astype(bf)                                   # (D_in, L2)
    w_mv = jnp.concatenate([params["w_mu"], params["w_var"]], axis=1).astype(bf)  # (L2, 2L)
    b_mv = jnp.concatenate([params["b_mu"], params["b_var"]], axis=1)    # (1, 2L) f32
    w_dec = params["w_dec"].astype(bf)                                   # (L, D_out)

    tb = _choose_batch_tile(B, tb_max, min_steps)
    grid = (pl.cdiv(B, tb),)

    cm_bytes = 2 if cm_dtype == jnp.bfloat16 else 4
    flops = 2 * B * (D_in * L2 + L2 * 2 * L + L * D_out)
    transcendentals = 2 * B * D_out + B * L
    bytes_accessed = (x_flat.size * 4 + eps.size * 4
                      + w_enc.size * 2 + params["b_enc"].size * 4
                      + w_mv.size * 2 + b_mv.size * 4
                      + w_dec.size * 2 + params["b_dec"].size * 4
                      + B * D_out * cm_bytes + B * 2 * L * 4)

    kernel = partial(cm_net_kernel, bf16_softplus=bf16_softplus)

    cm, stats = pl.pallas_call(
        kernel,
        out_shape=(
            jax.ShapeDtypeStruct((B, D_out), cm_dtype),
            jax.ShapeDtypeStruct((B, 2 * L), jnp.float32),
        ),
        grid_spec=pltpu.PrefetchScalarGridSpec(
            num_scalar_prefetch=0,
            grid=grid,
            in_specs=[
                pl.BlockSpec((tb, D_in), lambda i: (i, 0)),      # x         (tiled, f32)
                pl.BlockSpec((D_in, L2), lambda i: (0, 0)),      # W_enc     (resident)
                pl.BlockSpec((1, L2), lambda i: (0, 0)),         # b_enc
                pl.BlockSpec((L2, 2 * L), lambda i: (0, 0)),     # [W_mu|W_var]
                pl.BlockSpec((1, 2 * L), lambda i: (0, 0)),      # [b_mu|b_var]
                pl.BlockSpec((tb, L), lambda i: (i, 0)),         # eps       (tiled)
                pl.BlockSpec((L, D_out), lambda i: (0, 0)),      # W_dec
                pl.BlockSpec((1, D_out), lambda i: (0, 0)),      # b_dec
            ],
            out_specs=(
                pl.BlockSpec((tb, D_out), lambda i: (i, 0)),     # cm        (tiled)
                pl.BlockSpec((tb, 2 * L), lambda i: (i, 0)),     # [mu|log_var]
            ),
        ),
        compiler_params=pltpu.CompilerParams(
            dimension_semantics=("parallel",),
            vmem_limit_bytes=vmem_limit_bytes,
        ),
        cost_estimate=pl.CostEstimate(
            flops=flops,
            transcendentals=transcendentals,
            bytes_accessed=bytes_accessed,
        ),
    )(x_flat, w_enc, params["b_enc"], w_mv, b_mv,
      eps, w_dec, params["b_dec"])

    mu, log_var = stats[:, :L], stats[:, L:]
    return cm, mu, log_var


def init_params(key, c, h, w, class_no=2, latent=6):
    """Deterministic synthetic init matching nn.Linear shapes (stored transposed)."""
    d_in = c * h * w
    l2 = latent // 2
    d_out = h * w * class_no ** 2
    ks = jax.random.split(key, 8)

    def lin(kw, kb, fan_in, fan_out):
        bound = 1.0 / jnp.sqrt(fan_in)
        w_ = jax.random.uniform(kw, (fan_in, fan_out), jnp.float32, -bound, bound)
        b_ = jax.random.uniform(kb, (1, fan_out), jnp.float32, -bound, bound)
        return w_, b_

    w_enc, b_enc = lin(ks[0], ks[1], d_in, l2)
    w_mu, b_mu = lin(ks[2], ks[3], l2, latent)
    w_var, b_var = lin(ks[4], ks[5], l2, latent)
    w_dec, b_dec = lin(ks[6], ks[7], latent, d_out)
    return dict(w_enc=w_enc, b_enc=b_enc, w_mu=w_mu, b_mu=b_mu,
                w_var=w_var, b_var=b_var, w_dec=w_dec, b_dec=b_dec)


def _reference(x_nchw, params, eps, *, match_kernel):
    """Plain-JAX reference.  match_kernel=True applies bf16 operands at exactly
    the same points as the Pallas kernel (encoder/head/decoder matmuls, f32
    accumulation); match_kernel=False is the full-f32 PyTorch semantics."""
    B = x_nchw.shape[0]
    x_flat = x_nchw.reshape(B, -1)
    L = params["w_mu"].shape[1]
    if match_kernel:
        bf = jnp.bfloat16
        h = jnp.dot(x_flat.astype(bf), params["w_enc"].astype(bf),
                    preferred_element_type=jnp.float32)
        h = jnp.maximum(h + params["b_enc"], 0.0)
        w_mv = jnp.concatenate([params["w_mu"], params["w_var"]], axis=1).astype(bf)
        b_mv = jnp.concatenate([params["b_mu"], params["b_var"]], axis=1)
        stats = jnp.dot(h.astype(bf), w_mv, preferred_element_type=jnp.float32) + b_mv
        mu, lv = stats[:, :L], stats[:, L:]
        z = eps * jnp.exp(0.5 * lv) + mu
        dec = jnp.dot(z.astype(bf), params["w_dec"].astype(bf),
                      preferred_element_type=jnp.float32) + params["b_dec"]
        cm = jax.nn.softplus(dec)
    else:
        h = jnp.maximum(x_flat @ params["w_enc"] + params["b_enc"], 0.0)
        mu = h @ params["w_mu"] + params["b_mu"]
        lv = h @ params["w_var"] + params["b_var"]
        z = eps * jnp.exp(0.5 * lv) + mu
        cm = jax.nn.softplus(z @ params["w_dec"] + params["b_dec"])
    return cm, mu, lv


if __name__ == "__main__":
    # Small shapes consistent with the module's forward: x is (B, C, H, W).
    B, C, H, W = 2, 4, 16, 16
    CLASS_NO, LATENT = 2, 6

    key = jax.random.PRNGKey(0)
    k_x, k_eps, k_p = jax.random.split(key, 3)

    x = jax.random.normal(k_x, (B, C, H, W), dtype=jnp.float32)
    # reparameterize() draws eps ~ N(0,1) internally in torch; we pass it in
    # explicitly so the kernel is deterministic / comparable to a reference.
    eps = jax.random.normal(k_eps, (B, LATENT), dtype=jnp.float32)
    params = init_params(k_p, C, H, W, CLASS_NO, LATENT)

    cm, mu, log_var = cm_net_forward(x, params, eps)
    jax.block_until_ready((cm, mu, log_var))

    assert cm.shape == (B, H * W * CLASS_NO ** 2)
    assert mu.shape == (B, LATENT) and log_var.shape == (B, LATENT)

    # Numerics-matched reference (same bf16 operand points, f32 accumulate).
    cm_r, mu_r, lv_r = _reference(x, params, eps, match_kernel=True)
    assert jnp.allclose(cm, cm_r, atol=1e-3, rtol=1e-3)
    assert jnp.allclose(mu, mu_r, atol=1e-3, rtol=1e-3)
    assert jnp.allclose(log_var, lv_r, atol=1e-3, rtol=1e-3)

    # Full-f32 module semantics (bf16 matmul drift only) -- loose tolerance.
    cm_f, mu_f, lv_f = _reference(x, params, eps, match_kernel=False)
    assert jnp.allclose(cm, cm_f, atol=5e-2, rtol=5e-2)
    assert jnp.allclose(mu, mu_f, atol=5e-2, rtol=5e-2)
    assert jnp.allclose(log_var, lv_f, atol=5e-2, rtol=5e-2)

    # Exercise the batch grid with multiple blocks (4 grid steps of 16 rows).
    B2 = 64
    k_x2, k_e2 = jax.random.split(jax.random.PRNGKey(1))
    x2 = jax.random.normal(k_x2, (B2, C, H, W), dtype=jnp.float32)
    eps2 = jax.random.normal(k_e2, (B2, LATENT), dtype=jnp.float32)
    cm2, mu2, lv2 = cm_net_forward(x2, params, eps2, tb_max=16)
    jax.block_until_ready((cm2, mu2, lv2))
    cm2_r, mu2_r, lv2_r = _reference(x2, params, eps2, match_kernel=True)
    assert jnp.allclose(cm2, cm2_r, atol=1e-3, rtol=1e-3)
    assert jnp.allclose(mu2, mu2_r, atol=1e-3, rtol=1e-3)
    assert jnp.allclose(lv2, lv2_r, atol=1e-3, rtol=1e-3)

    # Smoke-test the v6e/v7x bf16-softplus / bf16-cm path (loose tolerance).
    cm3, mu3, lv3 = cm_net_forward(x2, params, eps2, tb_max=32,
                                   bf16_softplus=True, cm_dtype=jnp.bfloat16)
    jax.block_until_ready((cm3, mu3, lv3))
    assert jnp.allclose(cm3.astype(jnp.float32), cm2_r, atol=5e-2, rtol=5e-2)
    assert jnp.allclose(mu3, mu2_r, atol=1e-3, rtol=1e-3)
    assert jnp.allclose(lv3, lv2_r, atol=1e-3, rtol=1e-3)

    print("KERNEL_OK")
</pallas_src>

<mosaic_0001>
module attributes {stable_mosaic.version = 11 : i64} {
  func.func @cm_net_kernel(%arg0: i32, %arg1: memref<2x1024xf32, #tpu.memory_space<vmem>>, %arg2: memref<1024x3xbf16, #tpu.memory_space<vmem>>, %arg3: memref<1x3xf32, #tpu.memory_space<vmem>>, %arg4: memref<3x12xbf16, #tpu.memory_space<vmem>>, %arg5: memref<1x12xf32, #tpu.memory_space<vmem>>, %arg6: memref<2x6xf32, #tpu.memory_space<vmem>>, %arg7: memref<6x1024xbf16, #tpu.memory_space<vmem>>, %arg8: memref<1x1024xf32, #tpu.memory_space<vmem>>, %arg9: memref<2x1024xf32, #tpu.memory_space<vmem>>, %arg10: memref<2x12xf32, #tpu.memory_space<vmem>>) attributes {dimension_semantics = [#tpu.dimension_semantics<parallel>], iteration_bounds = array<i64: 1>, scalar_prefetch = 0 : i64, scratch_operands = 0 : i64, tpu.core_type = #tpu.core_type<tc>, window_params = [{transform_indices = @transform_0, window_bounds = array<i64: 2, 1024>}, {pipeline_mode = #tpu.pipeline_mode<synchronous>, transform_indices = @transform_1, window_bounds = array<i64: 1024, 3>}, {pipeline_mode = #tpu.pipeline_mode<synchronous>, transform_indices = @transform_2, window_bounds = array<i64: 1, 3>}, {pipeline_mode = #tpu.pipeline_mode<synchronous>, transform_indices = @transform_3, window_bounds = array<i64: 3, 12>}, {pipeline_mode = #tpu.pipeline_mode<synchronous>, transform_indices = @transform_4, window_bounds = array<i64: 1, 12>}, {transform_indices = @transform_5, window_bounds = array<i64: 2, 6>}, {pipeline_mode = #tpu.pipeline_mode<synchronous>, transform_indices = @transform_6, window_bounds = array<i64: 6, 1024>}, {pipeline_mode = #tpu.pipeline_mode<synchronous>, transform_indices = @transform_7, window_bounds = array<i64: 1, 1024>}, {transform_indices = @transform_8, window_bounds = array<i64: 2, 1024>}, {transform_indices = @transform_9, window_bounds = array<i64: 2, 12>}]} {
    %c0 = arith.constant 0 : index
    %c0_0 = arith.constant 0 : index
    %0 = vector.load %arg1[%c0, %c0_0] : memref<2x1024xf32, #tpu.memory_space<vmem>>, vector<2x1024xf32>
    %1 = arith.truncf %0 : vector<2x1024xf32> to vector<2x1024xbf16>
    %c0_1 = arith.constant 0 : index
    %c0_2 = arith.constant 0 : index
    %2 = vector.load %arg2[%c0_1, %c0_2] : memref<1024x3xbf16, #tpu.memory_space<vmem>>, vector<1024x3xbf16>
    %cst = arith.constant dense<0.000000e+00> : vector<2x3xf32>
    %3 = tpu.matmul %1, %2, %cst {dimension_numbers = #tpu.dot_dimension_numbers<[1], [0], [0], [1], [0, 0, 1, 1], [], []>} : vector<2x1024xbf16>, vector<1024x3xbf16>, vector<2x3xf32> -> vector<2x3xf32>
    %c0_3 = arith.constant 0 : index
    %c0_4 = arith.constant 0 : index
    %4 = vector.load %arg3[%c0_3, %c0_4] : memref<1x3xf32, #tpu.memory_space<vmem>>, vector<1x3xf32>
    %5 = vector.broadcast %4 : vector<1x3xf32> to vector<2x3xf32>
    %6 = arith.addf %3, %5 : vector<2x3xf32>
    %cst_5 = arith.constant 0.000000e+00 : f32
    %7 = vector.broadcast %cst_5 : f32 to vector<2x3xf32>
    %8 = arith.maximumf %6, %7 : vector<2x3xf32>
    %9 = arith.truncf %8 : vector<2x3xf32> to vector<2x3xbf16>
    %c0_6 = arith.constant 0 : index
    %c0_7 = arith.constant 0 : index
    %10 = vector.load %arg4[%c0_6, %c0_7] : memref<3x12xbf16, #tpu.memory_space<vmem>>, vector<3x12xbf16>
    %cst_8 = arith.constant dense<0.000000e+00> : vector<2x12xf32>
    %11 = tpu.matmul %9, %10, %cst_8 {dimension_numbers = #tpu.dot_dimension_numbers<[1], [0], [0], [1], [0, 0, 1, 1], [], []>} : vector<2x3xbf16>, vector<3x12xbf16>, vector<2x12xf32> -> vector<2x12xf32>
    %c0_9 = arith.constant 0 : index
    %c0_10 = arith.constant 0 : index
    %12 = vector.load %arg5[%c0_9, %c0_10] : memref<1x12xf32, #tpu.memory_space<vmem>>, vector<1x12xf32>
    %13 = vector.broadcast %12 : vector<1x12xf32> to vector<2x12xf32>
    %14 = arith.addf %11, %13 : vector<2x12xf32>
    %15 = vector.extract_strided_slice %14 {offsets = [0, 0], sizes = [2, 6], strides = [1, 1]} : vector<2x12xf32> to vector<2x6xf32>
    %16 = vector.extract_strided_slice %14 {offsets = [0, 6], sizes = [2, 6], strides = [1, 1]} : vector<2x12xf32> to vector<2x6xf32>
    %c0_11 = arith.constant 0 : index
    %c0_12 = arith.constant 0 : index
    %17 = vector.load %arg6[%c0_11, %c0_12] : memref<2x6xf32, #tpu.memory_space<vmem>>, vector<2x6xf32>
    %cst_13 = arith.constant 5.000000e-01 : f32
    %18 = vector.broadcast %cst_13 : f32 to vector<2x6xf32>
    %19 = arith.mulf %18, %16 : vector<2x6xf32>
    %20 = math.exp %19 : vector<2x6xf32>
    %21 = arith.mulf %17, %20 : vector<2x6xf32>
    %22 = arith.addf %21, %15 : vector<2x6xf32>
    %23 = arith.truncf %22 : vector<2x6xf32> to vector<2x6xbf16>
    %c0_14 = arith.constant 0 : index
    %c0_15 = arith.constant 0 : index
    %24 = vector.load %arg7[%c0_14, %c0_15] : memref<6x1024xbf16, #tpu.memory_space<vmem>>, vector<6x1024xbf16>
    %cst_16 = arith.constant dense<0.000000e+00> : vector<2x1024xf32>
    %25 = tpu.matmul %23, %24, %cst_16 {dimension_numbers = #tpu.dot_dimension_numbers<[1], [0], [0], [1], [0, 0, 1, 1], [], []>} : vector<2x6xbf16>, vector<6x1024xbf16>, vector<2x1024xf32> -> vector<2x1024xf32>
    %c0_17 = arith.constant 0 : index
    %c0_18 = arith.constant 0 : index
    %26 = vector.load %arg8[%c0_17, %c0_18] : memref<1x1024xf32, #tpu.memory_space<vmem>>, vector<1x1024xf32>
    %27 = vector.broadcast %26 : vector<1x1024xf32> to vector<2x1024xf32>
    %28 = arith.addf %25, %27 : vector<2x1024xf32>
    %cst_19 = arith.constant 0.000000e+00 : f32
    %29 = vector.broadcast %cst_19 : f32 to vector<2x1024xf32>
    %30 = arith.maximumf %28, %29 : vector<2x1024xf32>
    %31 = math.absf %28 : vector<2x1024xf32>
    %cst_20 = arith.constant 0.000000e+00 : f32
    %32 = vector.broadcast %cst_20 : f32 to vector<2x1024xf32>
    %33 = arith.subf %32, %31 : vector<2x1024xf32>
    %34 = math.exp %33 : vector<2x1024xf32>
    %35 = math.log1p %34 : vector<2x1024xf32>
    %36 = arith.addf %30, %35 : vector<2x1024xf32>
    %c0_21 = arith.constant 0 : index
    %c0_22 = arith.constant 0 : index
    %37 = vector.load %arg9[%c0_21, %c0_22] : memref<2x1024xf32, #tpu.memory_space<vmem>>, vector<2x1024xf32>
    tpu.vector_store %arg9[%c0_21, %c0_22], %36 {strides = array<i32>} : memref<2x1024xf32, #tpu.memory_space<vmem>>, vector<2x1024xf32>,
    %c0_23 = arith.constant 0 : index
    %c0_24 = arith.constant 0 : index
    %38 = vector.load %arg10[%c0_23, %c0_24] : memref<2x12xf32, #tpu.memory_space<vmem>>, vector<2x12xf32>
    tpu.vector_store %arg10[%c0_23, %c0_24], %14 {strides = array<i32>} : memref<2x12xf32, #tpu.memory_space<vmem>>, vector<2x12xf32>,
    return
  }
  func.func @transform_0(%arg0: i32) -> (i32, i32) {
    %c0_i32 = arith.constant 0 : i32
    %c0_i32_0 = arith.constant 0 : i32
    return %arg0, %c0_i32 : i32, i32
  }
  func.func @transform_1(%arg0: i32) -> (i32, i32) {
    %c0_i32 = arith.constant 0 : i32
    %c0_i32_0 = arith.constant 0 : i32
    %c0_i32_1 = arith.constant 0 : i32
    return %c0_i32, %c0_i32_0 : i32, i32
  }
  func.func @transform_2(%arg0: i32) -> (i32, i32) {
    %c0_i32 = arith.constant 0 : i32
    %c0_i32_0 = arith.constant 0 : i32
    %c0_i32_1 = arith.constant 0 : i32
    return %c0_i32, %c0_i32_0 : i32, i32
  }
  func.func @transform_3(%arg0: i32) -> (i32, i32) {
    %c0_i32 = arith.constant 0 : i32
    %c0_i32_0 = arith.constant 0 : i32
    %c0_i32_1 = arith.constant 0 : i32
    return %c0_i32, %c0_i32_0 : i32, i32
  }
  func.func @transform_4(%arg0: i32) -> (i32, i32) {
    %c0_i32 = arith.constant 0 : i32
    %c0_i32_0 = arith.constant 0 : i32
    %c0_i32_1 = arith.constant 0 : i32
    return %c0_i32, %c0_i32_0 : i32, i32
  }
  func.func @transform_5(%arg0: i32) -> (i32, i32) {
    %c0_i32 = arith.constant 0 : i32
    %c0_i32_0 = arith.constant 0 : i32
    return %arg0, %c0_i32 : i32, i32
  }
  func.func @transform_6(%arg0: i32) -> (i32, i32) {
    %c0_i32 = arith.constant 0 : i32
    %c0_i32_0 = arith.constant 0 : i32
    %c0_i32_1 = arith.constant 0 : i32
    return %c0_i32, %c0_i32_0 : i32, i32
  }
  func.func @transform_7(%arg0: i32) -> (i32, i32) {
    %c0_i32 = arith.constant 0 : i32
    %c0_i32_0 = arith.constant 0 : i32
    %c0_i32_1 = arith.constant 0 : i32
    return %c0_i32, %c0_i32_0 : i32, i32
  }
  func.func @transform_8(%arg0: i32) -> (i32, i32) {
    %c0_i32 = arith.constant 0 : i32
    %c0_i32_0 = arith.constant 0 : i32
    return %arg0, %c0_i32 : i32, i32
  }
  func.func @transform_9(%arg0: i32) -> (i32, i32) {
    %c0_i32 = arith.constant 0 : i32
    %c0_i32_0 = arith.constant 0 : i32
    return %arg0, %c0_i32 : i32, i32
  }
}

</mosaic_0001>

<bundles_post_ra>
// kernel: tpu_custom_call.1
= control target key start
LH: loop header
LB: loop body
LE: loop exit
PB: predicated region body
PF: predicated region fallthrough
CT: control target
= control target key end

     0   :  { %15 = vsyncpa [#allocation3], 0  ;;  %s1863_s0 = inlined_call_operand.vmem [shape: f32[2,1024], index: 0, kind: input, shape index: {}]   ;;  %s1864_s1 = inlined_call_operand.vmem [shape: bf16[1024,3], index: 1, kind: input, shape index: {}]   ;;  %s1865_s2 = inlined_call_operand.vmem [shape: f32[1,3], index: 2, kind: input, shape index: {}]   ;;  %s1866_s3 = inlined_call_operand.vmem [shape: bf16[3,12], index: 3, kind: input, shape index: {}]   ;;  %s1867_s4 = inlined_call_operand.vmem [shape: f32[1,12], index: 4, kind: input, shape index: {}]   ;;  %s1868_s5 = inlined_call_operand.vmem [shape: f32[2,6], index: 5, kind: input, shape index: {}]   ;;  %s1869_s6 = inlined_call_operand.vmem [shape: bf16[6,1024], index: 6, kind: input, shape index: {}]   ;;  %s1870_s7 = inlined_call_operand.vmem [shape: f32[1,1024], index: 7, kind: input, shape index: {}]   ;;  %s1871_s8 = inlined_call_operand.hbm [shape: f32[2,1024], index: 8, kind: output, shape index: {0}]   ;;  %s1872_s9 = inlined_call_operand.hbm [shape: f32[2,12], index: 9, kind: output, shape index: {1}]  }
   0x1   :  { %v1354_v0 = vld [vmem:[%s1864_s1 + $0x38] sm:$0xff]  ;;  %v1353_v4 = vld [vmem:[%s1864_s1 + $0x30] sm:$0xff]  ;;  %v1352_v8 = vld [vmem:[%s1864_s1 + $0x28] sm:$0xff] }
   0x2   :  { %v1362_v1 = vld [vmem:[%s1864_s1 + $0x78] sm:$0xff]  ;;  %581 = vmatpush.bf16.msra.mxu0 %v1354_v0  ;;  %v1361_v5 = vld [vmem:[%s1864_s1 + $0x70] sm:$0xff]  ;;  %v1360_v9 = vld [vmem:[%s1864_s1 + $0x68] sm:$0xff] }
   0x3   :  { %v1370_v2 = vld [vmem:[%s1864_s1 + $0xb8] sm:$0xff]  ;;  %594 = vmatpush.bf16.msra.mxu1 %v1362_v1  ;;  %v1369_v6 = vld [vmem:[%s1864_s1 + $0xb0] sm:$0xff]  ;;  %v1368_v10 = vld [vmem:[%s1864_s1 + $0xa8] sm:$0xff] }
   0x4   :  { %v1378_v3 = vld [vmem:[%s1864_s1 + $0xf8] sm:$0xff]  ;;  %607 = vmatpush.bf16.msra.mxu2 %v1370_v2  ;;  %v1377_v7 = vld [vmem:[%s1864_s1 + $0xf0] sm:$0xff]  ;;  %v1376_v11 = vld [vmem:[%s1864_s1 + $0xe8] sm:$0xff] }
   0x5   :  { %620 = vmatpush.bf16.msra.mxu3 %v1378_v3  ;;  %v1351_v12 = vld [vmem:[%s1864_s1 + $0x20] sm:$0xff]  ;;  %v1350_v17 = vld [vmem:[%s1864_s1 + $0x18] sm:$0xff]  ;;  %v1349_v21 = vld [vmem:[%s1864_s1 + $0x10] sm:$0xff] }
   0x6   :  { %582 = vmatpush.bf16.msra.mxu0 %v1353_v4  ;;  %v1359_v13 = vld [vmem:[%s1864_s1 + $0x60] sm:$0xff]  ;;  %v1358_v18 = vld [vmem:[%s1864_s1 + $0x58] sm:$0xff]  ;;  %v1357_v22 = vld [vmem:[%s1864_s1 + $0x50] sm:$0xff] }
   0x7   :  { %595 = vmatpush.bf16.msra.mxu1 %v1361_v5  ;;  %v1367_v14 = vld [vmem:[%s1864_s1 + $0xa0] sm:$0xff]  ;;  %v1366_v19 = vld [vmem:[%s1864_s1 + $0x98] sm:$0xff] }
   0x8   :  { %608 = vmatpush.bf16.msra.mxu2 %v1369_v6  ;;  %v1375_v15 = vld [vmem:[%s1864_s1 + $0xe0] sm:$0xff]  ;;  %v1374_v20 = vld [vmem:[%s1864_s1 + $0xd8] sm:$0xff] }
   0x9   :  { %621 = vmatpush.bf16.msra.mxu3 %v1377_v7  ;;  %v34_v16 = vld [vmem:[%s1863_s0] sm:$0xff] }
   0xa   :  { %583 = vmatpush.bf16.msra.mxu0 %v1352_v8  ;;  %38 = vst [vmem:[#allocation1] ss:$4 sm:$0xff] %v34_v16 }
   0xb   :  { %596 = vmatpush.bf16.msra.mxu1 %v1360_v9 }
   0xc   :  { %609 = vmatpush.bf16.msra.mxu2 %v1368_v10 }
   0xd   :  { %622 = vmatpush.bf16.msra.mxu3 %v1376_v11 }
   0xe   :  { %584 = vmatpush.bf16.msra.mxu0 %v1351_v12 }
   0xf   :  { %597 = vmatpush.bf16.msra.mxu1 %v1359_v13 }
  0x10   :  { %610 = vmatpush.bf16.msra.mxu2 %v1367_v14 }
  0x11   :  { %623 = vmatpush.bf16.msra.mxu3 %v1375_v15 }
  0x12   :  { %585 = vmatpush.bf16.msra.mxu0 %v1350_v17 }
  0x13   :  { %598 = vmatpush.bf16.msra.mxu1 %v1358_v18 }
  0x14   :  { %16 = vsyncpa [#allocation5], 0  ;;  %611 = vmatpush.bf16.msra.mxu2 %v1366_v19  ;;  %v1365_v23 = vld [vmem:[%s1864_s1 + $0x90] sm:$0xff]  ;;  %v1348_v25 = vld [vmem:[%s1864_s1 + $0x8] sm:$0xff]  ;;  %vm696_vm0 = vcmask 1040384   ;;  %vm697_vm1 = vcmask 1041408  }
  0x15   :  { %624 = vmatpush.bf16.msra.mxu3 %v1374_v20  ;;  %v1373_v24 = vld [vmem:[%s1864_s1 + $0xd0] sm:$0xff]  ;;  %v1356_v26 = vld [vmem:[%s1864_s1 + $0x48] sm:$0xff]  ;;  %v1347_v30 = vld [vmem:[%s1864_s1] sm:$0xff]  ;;  %v1503_v19 = vmov 65535   ;;  %vm692_vm2 = vcmask 23552   ;;  %vm773_vm3 = vcmask 1042432  }
  0x16   :  { %586 = vmatpush.bf16.msra.mxu0 %v1349_v21  ;;  %v1364_v27 = vld [vmem:[%s1864_s1 + $0x88] sm:$0xff]  ;;  %v1355_v31 = vld [vmem:[%s1864_s1 + $0x40] sm:$0xff]  ;;  %v1386_v34 = vld [vmem:[%s1864_s1 + $0x138] sm:$0xff]  ;;  %v698_v20 = vsel %vm696_vm0, 4294967295, %v1503_v19  ;;  %vm1048_vm4 = vcmask 91136   ;;  %s1504_s18 = smov 122  }
  0x17   :  { %599 = vmatpush.bf16.msra.mxu1 %v1357_v22  ;;  %v1372_v28 = vld [vmem:[%s1864_s1 + $0xc8] sm:$0xff]  ;;  %v1363_v32 = vld [vmem:[%s1864_s1 + $0x80] sm:$0xff]  ;;  %v1394_v35 = vld [vmem:[%s1864_s1 + $0x178] sm:$0xff]  ;;  %v699_v21 = vsel %vm697_vm1, %v698_v20, 0  ;;  %vm769_vm5 = vcmask 48128   ;;  %s1505_s23 = smov [#allocation4]  }
  0x18   :  { %612 = vmatpush.bf16.msra.mxu2 %v1365_v23  ;;  %v35_v29 = vld [vmem:[%s1863_s0 + $0x8] sm:$0xff]  ;;  %v1371_v33 = vld [vmem:[%s1864_s1 + $0xc0] sm:$0xff]  ;;  %v43_v36 = vld.sshfl [vmem:[#allocation1 + $0x10] sm:$0xff pattern:$0x73625140]  ;;  %s1066_s24 = sshll.u32 %s1505_s23, 4  ;;  %s1067_s24 = int_to_ptr.vmem [resolvable:$true] %s1066_s24 }
  0x19   :  { %625 = vmatpush.bf16.msra.mxu3 %v1373_v24  ;;  %40 = vst [vmem:[#allocation1 + $0x20] ss:$4 sm:$0xff] %v35_v29  ;;  %v41_v37 = vld.sshfl [vmem:[#allocation1] sm:$0xff pattern:$0x73625140]  ;;  %v1402_v40 = vld [vmem:[%s1864_s1 + $0x1b8] sm:$0xff]  ;;  %v59_v42 = vpack.c.bf16 %v43_v36, %v43_v36 }
  0x1a   :  { %587 = vmatpush.bf16.msra.mxu0 %v1348_v25  ;;  %v44_v38 = vld.sshfl [vmem:[#allocation1 + $0x18] sm:$0xff pattern:$0x73625140]  ;;  %v42_v39 = vld.sshfl [vmem:[#allocation1 + $0x8] sm:$0xff pattern:$0x73625140]  ;;  %v57_v43 = vpack.c.bf16 %v41_v37, %v41_v37 }
  0x1b   :  { %600 = vmatpush.bf16.msra.mxu1 %v1356_v26  ;;  %v1410_v41 = vld [vmem:[%s1864_s1 + $0x1f8] sm:$0xff]  ;;  %v60_v44 = vpack.c.bf16 %v44_v38, %v44_v38  ;;  %v58_v45 = vpack.c.bf16 %v42_v39, %v42_v39  ;;  %v1385_v46 = vld [vmem:[%s1864_s1 + $0x130] sm:$0xff]  ;;  %v1384_v50 = vld [vmem:[%s1864_s1 + $0x128] sm:$0xff]  ;;  %s1068_s27 = sshll.u32 %s1872_s9, 4  ;;  %vm1037_vm10 = vcmask 1045508   ;;  %vm1039_vm11 = vcmask 1043456   ;;  %s1069_s27 = int_to_ptr.hbm [resolvable:$true] %s1068_s27 }
  0x1c   :  { %613 = vmatpush.bf16.msra.mxu2 %v1364_v27  ;;  %v1393_v47 = vld [vmem:[%s1864_s1 + $0x170] sm:$0xff]  ;;  %v1392_v51 = vld [vmem:[%s1864_s1 + $0x168] sm:$0xff]  ;;  %v1383_v54 = vld [vmem:[%s1864_s1 + $0x120] sm:$0xff]  ;;  %s1057_s10 = sshll.u32 %s1871_s8, 4  ;;  %s1058_s10 = int_to_ptr.hbm [resolvable:$true] %s1057_s10 }
  0x1d   :  { %626 = vmatpush.bf16.msra.mxu3 %v1372_v28  ;;  %v1401_v48 = vld [vmem:[%s1864_s1 + $0x1b0] sm:$0xff]  ;;  %v1400_v52 = vld [vmem:[%s1864_s1 + $0x1a8] sm:$0xff]  ;;  %v1391_v55 = vld [vmem:[%s1864_s1 + $0x160] sm:$0xff] }
  0x1e   :  { %588 = vmatpush.bf16.msra.mxu0 %v1347_v30  ;;  %v1409_v49 = vld [vmem:[%s1864_s1 + $0x1f0] sm:$0xff]  ;;  %v1408_v53 = vld [vmem:[%s1864_s1 + $0x1e8] sm:$0xff]  ;;  %v1399_v56 = vld [vmem:[%s1864_s1 + $0x1a0] sm:$0xff] }
  0x1f   :  { %601 = vmatpush.bf16.msra.mxu1 %v1355_v31  ;;  %v1407_v57 = vld [vmem:[%s1864_s1 + $0x1e0] sm:$0xff]  ;;  %v1382_v58 = vld [vmem:[%s1864_s1 + $0x118] sm:$0xff]  ;;  %v1381_v62 = vld [vmem:[%s1864_s1 + $0x110] sm:$0xff] }
  0x20   :  { %614 = vmatpush.bf16.msra.mxu2 %v1363_v32  ;;  %v1390_v59 = vld [vmem:[%s1864_s1 + $0x158] sm:$0xff]  ;;  %v1389_v63 = vld [vmem:[%s1864_s1 + $0x150] sm:$0xff]  ;;  %v1380_v2 = vld [vmem:[%s1864_s1 + $0x108] sm:$0xff] }
  0x21   :  { %627 = vmatpush.bf16.msra.mxu3 %v1371_v33  ;;  %589 = vmatmul.bf16.vlgmr.msra.gmra.mxu0 %v57_v43  ;;  %v1398_v60 = vld [vmem:[%s1864_s1 + $0x198] sm:$0xff]  ;;  %v1397_v0 = vld [vmem:[%s1864_s1 + $0x190] sm:$0xff]  ;;  %v1388_v3 = vld [vmem:[%s1864_s1 + $0x148] sm:$0xff] }
  0x22   :  { %633 = vmatpush.bf16.msrb.mxu0 %v1386_v34  ;;  %602 = vmatmul.bf16.vlgmr.msra.gmra.mxu1 %v58_v45  ;;  %v1406_v61 = vld [vmem:[%s1864_s1 + $0x1d8] sm:$0xff]  ;;  %v1405_v1 = vld [vmem:[%s1864_s1 + $0x1d0] sm:$0xff]  ;;  %v1396_v4 = vld [vmem:[%s1864_s1 + $0x188] sm:$0xff] }
  0x23   :  { %646 = vmatpush.bf16.msrb.mxu1 %v1394_v35  ;;  %615 = vmatmul.bf16.vlgmr.msra.gmra.mxu2 %v59_v42  ;;  %v1404_v5 = vld [vmem:[%s1864_s1 + $0x1c8] sm:$0xff]  ;;  %v1379_v6 = vld [vmem:[%s1864_s1 + $0x100] sm:$0xff]  ;;  %v47_v12 = vld.sshfl [vmem:[#allocation1 + $0x30] sm:$0xff pattern:$0x73625140] }
  0x24   :  { %659 = vmatpush.bf16.msrb.mxu2 %v1402_v40  ;;  %628 = vmatmul.bf16.vlgmr.msra.gmra.mxu3 %v60_v44  ;;  %v1387_v7 = vld [vmem:[%s1864_s1 + $0x140] sm:$0xff]  ;;  %v46_v11 = vld.sshfl [vmem:[#allocation1 + $0x28] sm:$0xff pattern:$0x73625140]  ;;  %v63_v16 = vpack.c.bf16 %v47_v12, %v47_v12 }
  0x25   :  { %672 = vmatpush.bf16.msrb.mxu3 %v1410_v41  ;;  %v1395_v8 = vld [vmem:[%s1864_s1 + $0x180] sm:$0xff]  ;;  %v48_v13 = vld.sshfl [vmem:[#allocation1 + $0x38] sm:$0xff pattern:$0x73625140]  ;;  %v62_v15 = vpack.c.bf16 %v46_v11, %v46_v11 }
  0x26   :  { %634 = vmatpush.bf16.msrb.mxu0 %v1385_v46  ;;  %v1403_v9 = vld [vmem:[%s1864_s1 + $0x1c0] sm:$0xff]  ;;  %v64_v17 = vpack.c.bf16 %v48_v13, %v48_v13 }
  0x27   :  { %647 = vmatpush.bf16.msrb.mxu1 %v1393_v47  ;;  %v45_v10 = vld.sshfl [vmem:[#allocation1 + $0x20] sm:$0xff pattern:$0x73625140] }
  0x28   :  { %660 = vmatpush.bf16.msrb.mxu2 %v1401_v48  ;;  %v61_v14 = vpack.c.bf16 %v45_v10, %v45_v10  ;;  %v687_v18 = vld [vmem:[%s1866_s3] sm:$0x3] }
  0x29   :  { %673 = vmatpush.bf16.msrb.mxu3 %v1409_v49  ;;  %v701_v22 = vand.u32 %v699_v21, %v687_v18  ;;  %v1415_v29 = vld [vmem:[%s1865_s2] ss:$0 sm:$0xff] }
  0x2a   :  { %635 = vmatpush.bf16.msrb.mxu0 %v1384_v50  ;;  %v727_v50 = vld [vmem:[%s1869_s6] sm:$0x77] }
  0x2b   :  { %648 = vmatpush.bf16.msrb.mxu1 %v1392_v51  ;;  %v728_v51 = vld [vmem:[%s1869_s6 + $0x8] sm:$0x77]  ;;  %v716_v21 = vld [vmem:[%s1868_s5] sm:$0x3] }
  0x2c   :  { %661 = vmatpush.bf16.msrb.mxu2 %v1400_v52  ;;  %v754_v52 = vunpack.c.h.b16 %v727_v50 }
  0x2d   :  { %674 = vmatpush.bf16.msrb.mxu3 %v1408_v53  ;;  %v755_v53 = vunpack.c.l.b16 %v728_v51 }
  0x2e   :  { %636 = vmatpush.bf16.msrb.mxu0 %v1383_v54  ;;  %v756_v54 = vunpack.c.h.b16 %v728_v51 }
  0x2f   :  { %649 = vmatpush.bf16.msrb.mxu1 %v1391_v55  ;;  %v753_v55 = vunpack.c.l.b16 %v727_v50 }
  0x30   :  { %662 = vmatpush.bf16.msrb.mxu2 %v1399_v56  ;;  %v762_v56 = vpack.c.b16 %v754_v52, %v754_v52 }
  0x31   :  { %675 = vmatpush.bf16.msrb.mxu3 %v1407_v57  ;;  %v763_v57 = vpack.c.b16 %v755_v53, %v755_v53 }
  0x32   :  { %637 = vmatpush.bf16.msrb.mxu0 %v1382_v58  ;;  %v764_v58 = vpack.c.b16 %v756_v54, %v756_v54 }
  0x33   :  { %650 = vmatpush.bf16.msrb.mxu1 %v1390_v59  ;;  %v761_v59 = vpack.c.b16 %v753_v55, %v753_v55 }
  0x34   :  { %663 = vmatpush.bf16.msrb.mxu2 %v1398_v60  ;;  %v778_v60 = vsel %vm773_vm3, %v762_v56, 0 }
  0x35   :  { %676 = vmatpush.bf16.msrb.mxu3 %v1406_v61  ;;  %v781_v61 = vsel %vm773_vm3, %v763_v57, 0 }
  0x36   :  { %638 = vmatpush.bf16.msrb.mxu0 %v1381_v62  ;;  %v784_v62 = vsel %vm773_vm3, %v764_v58, 0 }
  0x37   :  { %651 = vmatpush.bf16.msrb.mxu1 %v1389_v63  ;;  %v775_v63 = vsel %vm773_vm3, %v761_v59, 0 }
  0x38   :  { %664 = vmatpush.bf16.msrb.mxu2 %v1397_v0  ;;  %v1416_v0 = vld [vmem:[%s1867_s4] ss:$0 sm:$0xff] }
  0x39   :  { %677 = vmatpush.bf16.msrb.mxu3 %v1405_v1 }
  0x3a   :  { %639 = vmatpush.bf16.msrb.mxu0 %v1380_v2 }
  0x3b   :  { %652 = vmatpush.bf16.msrb.mxu1 %v1388_v3 }
  0x3c   :  { %665 = vmatpush.bf16.msrb.mxu2 %v1396_v4 }
  0x3d   :  { %678 = vmatpush.bf16.msrb.mxu3 %v1404_v5 }
  0x3e   :  { %640 = vmatpush.bf16.msrb.mxu0 %v1379_v6 }
  0x3f   :  { %653 = vmatpush.bf16.msrb.mxu1 %v1387_v7  ;;  %v729_v7 = vld [vmem:[%s1869_s6 + $0x10] sm:$0x77] }
  0x40   :  { %666 = vmatpush.bf16.msrb.mxu2 %v1395_v8  ;;  %v730_v8 = vld [vmem:[%s1869_s6 + $0x18] sm:$0x77]  ;;  %v757_v12 = vunpack.c.l.b16 %v729_v7 }
  0x41   :  { %679 = vmatpush.bf16.msrb.mxu3 %v1403_v9  ;;  %641 = vmatmul.bf16.vlgmr.msrb.gmra.mxu0 %v61_v14  ;;  %v758_v9 = vunpack.c.h.b16 %v729_v7  ;;  %v759_v10 = vunpack.c.l.b16 %v730_v8  ;;  %v760_v11 = vunpack.c.h.b16 %v730_v8 }
  0x42   :  { %654 = vmatmul.bf16.vlgmr.msrb.gmra.mxu1 %v62_v15  ;;  %710 = vmatpush.bf16.msra.mxu0 %v701_v22 }
  0x43   :  { %667 = vmatmul.bf16.vlgmr.msrb.gmra.mxu2 %v63_v16  ;;  %805 = vmatpush.bf16.msra.mxu1 %v775_v63  ;;  %v766_v13 = vpack.c.b16 %v758_v9, %v758_v9  ;;  %v767_v14 = vpack.c.b16 %v759_v10, %v759_v10  ;;  %v768_v15 = vpack.c.b16 %v760_v11, %v760_v11 }
  0x44   :  { %680 = vmatmul.bf16.vlgmr.msrb.gmra.mxu3 %v64_v17  ;;  %818 = vmatpush.bf16.msra.mxu2 %v778_v60  ;;  %v765_v16 = vpack.c.b16 %v757_v12, %v757_v12 }
  0x45   :  { %831 = vmatpush.bf16.msra.mxu3 %v781_v61  ;;  %v790_v17 = vsel %vm773_vm3, %v766_v13, 0  ;;  %v793_v18 = vsel %vm773_vm3, %v767_v14, 0  ;;  %v796_v19 = vsel %vm773_vm3, %v768_v15, 0 }
  0x46   :  { %844 = vmatpush.bf16.msrb.mxu0 %v784_v62  ;;  %v787_v20 = vsel %vm773_vm3, %v765_v16, 0 }
  0x47   :  { %857 = vmatpush.bf16.msrb.mxu1 %v787_v20 }
  0x48   :  { %870 = vmatpush.bf16.msrb.mxu2 %v790_v17 }
  0x49   :  { %883 = vmatpush.bf16.msrb.mxu3 %v793_v18 }
  0x9e   :  { %v590_v23 = vpop.f32.mrf.mxu0 }
  0x9f   :  { %v603_v24 = vpop.f32.mrf.mxu1  ;;  %v591_v32 = vadd.f32 %v1415_v29, %v590_v23 }
  0xa1   :  { %v604_v33 = vadd.f32 %v603_v24, %v591_v32 }
  0xa6   :  { %v616_v25 = vpop.f32.mrf.mxu2  ;;  %v592_v27 = vpop.f32.mrf.mxu0 }
  0xa7   :  { %v629_v26 = vpop.f32.mrf.mxu3  ;;  %v605_v28 = vpop.f32.mrf.mxu1  ;;  %v617_v34 = vadd.f32 %v616_v25, %v604_v33 }
  0xa9   :  { %v630_v35 = vadd.f32 %v629_v26, %v617_v34  ;;  %v1794_v26 = vld [vmem:[%s1870_s7] sm:$0xff]  ;;  %s1506_s7 = smov [#allocation2]  }
  0xaa   :  { %v733_v27 = vperm.slane %v1794_v26, 0  ;;  %v736_v28 = vperm.slane %v1794_v26, 3  ;;  %v734_v34 = vperm.slane %v1794_v26, 1  ;;  %v737_v52 = vperm.slane %v1794_v26, 4  ;;  %s1055_s9 = sshll.u32 %s1506_s7, 4  ;;  %s1056_s9 = int_to_ptr.vmem [resolvable:$true] %s1055_s9 }
  0xab   :  { %v740_v55 = vperm.slane %v1794_v26, 7  ;;  %v739_v11 = vperm.slane %v1794_v26, 6 }
  0xae   :  { %v618_v30 = vpop.f32.mrf.mxu2 }
  0xaf   :  { %v631_v31 = vpop.f32.mrf.mxu3 }
  0xbe   :  { %v642_v36 = vpop.f32.mrf.mxu0 }
  0xbf   :  { %v655_v37 = vpop.f32.mrf.mxu1  ;;  %v643_v38 = vadd.f32 %v642_v36, %v630_v35  ;;  %v735_v36 = vperm.slane %v1794_v26, 2 }
  0xc1   :  { %v656_v39 = vadd.f32 %v655_v37, %v643_v38 }
  0xc6   :  { %v668_v40 = vpop.f32.mrf.mxu2  ;;  %v644_v43 = vpop.f32.mrf.mxu0 }
  0xc7   :  { %v681_v41 = vpop.f32.mrf.mxu3  ;;  %v669_v42 = vadd.f32 %v668_v40, %v656_v39  ;;  %v657_v44 = vpop.f32.mrf.mxu1 }
  0xc9   :  { %v682_v45 = vadd.f32 %v681_v41, %v669_v42 }
  0xcb   :  { %v685_v46 = vmax.f32 %v682_v45, 0.0 }
  0xcd   :  { %v686_v47 = vpack.c.bf16 %v685_v46, %v685_v46 }
  0xce   :  { %v670_v48 = vpop.f32.mrf.mxu2 }
  0xcf   :  { %v683_v49 = vpop.f32.mrf.mxu3  ;;  %1338 = vmatmul.msk.bf16.vlgmr.msra.gmra.mxu0 %vm692_vm2, %v686_v47 }
  0xd0   :  { %896 = vmatpush.bf16.msra.mxu0 %v796_v19 }
 0x14c   :  { %v712_v1 = vpop.f32.mrf.mxu0 }
 0x14d   :  { %v713_v2 = vadd.f32 %v1416_v0, %v712_v1 }
 0x14f   :  { %v717_v3 = vmul.f32 0.5, %v713_v2  ;;  %1049 = vst.msk [vmem:[#allocation4] sm:$0x3] %vm1048_vm4, %v713_v2 }
 0x150   :  { %1071 = dma.vmem_to_hbm [thread:$0]  %s1067_s24, 32, %s1069_s27, [#allocation5]  }
 0x151   :  { %v718_v4 = vmul.f32 1.442695, %v717_v3 }
 0x153   :  { %1417 = vpow2.f32 %v718_v4 }
 0x154   :  { %v714_v5 = vpop.f32.mrf.mxu0 }
 0x155   :  { %v738_v5 = vperm.slane %v1794_v26, 5 }
 0x159   :  { %v1418_v6 = vpop.eup %1417 }
 0x15a   :  { %721 = vrot.lane.b32.xlu0 %v1418_v6, %s1504_s18 }
 0x1cc   :  { %v722_v22 = vpop.permute.xlu0 %721 }
 0x1cd   :  { %v724_v23 = vmul.f32 %v722_v22, %v716_v21 }
 0x1cf   :  { %v725_v24 = vadd.f32 %v724_v23, %v713_v2 }
 0x1d1   :  { %v726_v25 = vpack.c.bf16 %v725_v24, %v725_v24 }
 0x1d3   :  { %1339 = vmatmul.msk.bf16.vlgmr.msra.gmra.mxu1 %vm769_vm5, %v726_v25  ;;  %1340 = vmatmul.msk.bf16.vlgmr.msra.gmra.mxu2 %vm769_vm5, %v726_v25 }
 0x1d4   :  { %1341 = vmatmul.msk.bf16.vlgmr.msra.gmra.mxu3 %vm769_vm5, %v726_v25  ;;  %1342 = vmatmul.msk.bf16.vlgmr.msrb.gmra.mxu0 %vm769_vm5, %v726_v25 }
 0x1e3   :  { %1343 = vmatmul.msk.bf16.vlgmr.msrb.gmra.mxu1 %vm769_vm5, %v726_v25  ;;  %1344 = vmatmul.msk.bf16.vlgmr.msrb.gmra.mxu2 %vm769_vm5, %v726_v25 }
 0x1e4   :  { %1345 = vmatmul.msk.bf16.vlgmr.msrb.gmra.mxu3 %vm769_vm5, %v726_v25  ;;  %1346 = vmatmul.msk.bf16.vlgmr.msra.gmra.mxu0 %vm769_vm5, %v726_v25 }
 0x250   :  { %v807_v29 = vpop.f32.mrf.mxu1 }
 0x251   :  { %v1798_v30 = vadd.f32 %v807_v29, %v733_v27  ;;  %v846_v31 = vpop.f32.mrf.mxu0 }
 0x252   :  { %v1800_v32 = vadd.f32 %v846_v31, %v736_v28 }
 0x253   :  { %v910_v33 = vand.u32 2147483647, %v1798_v30 }
 0x254   :  { %v913_v35 = vand.u32 2147483647, %v1800_v32  ;;  %v905_v22 = vmax.f32 %v1800_v32, 0.0 }
 0x255   :  { %v918_v37 = vsub.f32 0.0, %v910_v33 }
 0x256   :  { %v921_v38 = vsub.f32 0.0, %v913_v35  ;;  %v820_v39 = vpop.f32.mrf.mxu2 }
 0x257   :  { %v926_v40 = vmul.f32 1.442695, %v918_v37  ;;  %v1806_v41 = vadd.f32 %v820_v39, %v734_v34  ;;  %v833_v42 = vpop.f32.mrf.mxu3 }
 0x258   :  { %v932_v43 = vmul.f32 1.442695, %v921_v38  ;;  %v1808_v44 = vadd.f32 %v833_v42, %v735_v36  ;;  %v809_v45 = vpop.f32.mrf.mxu1 }
 0x259   :  { %1419 = vpow2.f32 %v926_v40  ;;  %v911_v46 = vand.u32 2147483647, %v1806_v41  ;;  %v848_v47 = vpop.f32.mrf.mxu0  ;;  %v903_v28 = vmax.f32 %v1806_v41, 0.0 }
 0x25a   :  { %1421 = vpow2.f32 %v932_v43  ;;  %v912_v48 = vand.u32 2147483647, %v1808_v44  ;;  %v904_v45 = vmax.f32 %v1808_v44, 0.0 }
 0x25b   :  { %v919_v49 = vsub.f32 0.0, %v911_v46 }
 0x25c   :  { %v920_v50 = vsub.f32 0.0, %v912_v48 }
 0x25d   :  { %v928_v51 = vmul.f32 1.442695, %v919_v49 }
 0x25e   :  { %v930_v53 = vmul.f32 1.442695, %v920_v50  ;;  %v822_v54 = vpop.f32.mrf.mxu2 }
 0x25f   :  { %v1814_v56 = vpop.eup %1419  ;;  %1423 = vpow2.f32 %v928_v51  ;;  %v835_v57 = vpop.f32.mrf.mxu3 }
 0x260   :  { %v1422_v58 = vpop.eup %1421  ;;  %v942_v59 = vadd.f32 1.0, %v1814_v56  ;;  %1425 = vpow2.f32 %v930_v53  ;;  %v859_v60 = vpop.f32.mrf.mxu1  ;;  %v945_v7 = vmul.f32 -0.5, %v1814_v56  ;;  %v948_v21 = vand.u32 2147483647, %v1814_v56 }
 0x261   :  { %v969_v61 = vadd.f32 1.0, %v1422_v58  ;;  %v1817_v62 = vadd.f32 %v859_v60, %v737_v52  ;;  %v898_v63 = vpop.f32.mrf.mxu0  ;;  %v972_v1 = vmul.f32 -0.5, %v1422_v58  ;;  %v975_v12 = vand.u32 2147483647, %v1422_v58 }
 0x262   :  { %v1819_v0 = vadd.f32 %v898_v63, %v740_v55  ;;  %v946_v27 = vadd.f32 1.0, %v945_v7  ;;  %vm1838_vm7 = vcmp.lt.f32.partialorder %v948_v21, 0.0004427343 }
 0x263   :  { %1427 = vlog2.f32 %v969_v61  ;;  %v914_v2 = vand.u32 2147483647, %v1817_v62  ;;  %v973_v17 = vadd.f32 1.0, %v972_v1  ;;  %vm1829_vm6 = vcmp.lt.f32.partialorder %v975_v12, 0.0004427343 }
 0x264   :  { %1429 = vlog2.f32 %v942_v59  ;;  %v917_v3 = vand.u32 2147483647, %v1819_v0  ;;  %v947_v49 = vmul.f32 %v1814_v56, %v946_v27  ;;  %v902_v61 = vmax.f32 %v1798_v30, 0.0 }
 0x265   :  { %v1424_v4 = vpop.eup %1423  ;;  %v922_v9 = vsub.f32 0.0, %v914_v2  ;;  %v974_v36 = vmul.f32 %v1422_v58, %v973_v17 }
 0x266   :  { %v1426_v6 = vpop.eup %1425  ;;  %v951_v8 = vadd.f32 1.0, %v1424_v4  ;;  %v872_v10 = vpop.f32.mrf.mxu2  ;;  %v954_v13 = vmul.f32 -0.5, %v1424_v4  ;;  %v925_v15 = vsub.f32 0.0, %v917_v3  ;;  %v957_v32 = vand.u32 2147483647, %v1424_v4 }
 0x267   :  { %v960_v14 = vadd.f32 1.0, %v1426_v6  ;;  %v885_v16 = vpop.f32.mrf.mxu3  ;;  %v963_v18 = vmul.f32 -0.5, %v1426_v6  ;;  %v934_v23 = vmul.f32 1.442695, %v922_v9  ;;  %v1833_v34 = vadd.f32 %v872_v10, %v738_v5 }
 0x268   :  { %1431 = vlog2.f32 %v951_v8  ;;  %v861_v19 = vpop.f32.mrf.mxu1  ;;  %v940_v29 = vmul.f32 1.442695, %v925_v15  ;;  %v955_v33 = vadd.f32 1.0, %v954_v13  ;;  %v1835_v35 = vadd.f32 %v885_v16, %v739_v11 }
 0x269   :  { %v1428_v20 = vpop.eup %1427  ;;  %1433 = vlog2.f32 %v960_v14  ;;  %v900_v24 = vpop.f32.mrf.mxu0  ;;  %v964_v37 = vadd.f32 1.0, %v963_v18  ;;  %v966_v39 = vand.u32 2147483647, %v1426_v6  ;;  %v915_v40 = vand.u32 2147483647, %v1833_v34 }
 0x26a   :  { %v1430_v25 = vpop.eup %1429  ;;  %v971_v26 = vmul.f32 0.6931472, %v1428_v20  ;;  %1435 = vpow2.f32 %v940_v29  ;;  %v916_v46 = vand.u32 2147483647, %v1835_v35  ;;  %v956_v51 = vmul.f32 %v1424_v4, %v955_v33 }
 0x26b   :  { %v944_v38 = vmul.f32 0.6931472, %v1430_v25  ;;  %1437 = vpow2.f32 %v934_v23  ;;  %v923_v52 = vsub.f32 0.0, %v915_v40  ;;  %vm958_vm8 = vcmp.lt.f32.partialorder %v957_v32, 0.0004427343 }
 0x26c   :  { %v977_v43 = vsel %vm1829_vm6, %v974_v36, %v971_v26  ;;  %v965_v55 = vmul.f32 %v1426_v6, %v964_v37  ;;  %v924_v57 = vsub.f32 0.0, %v916_v46  ;;  %vm967_vm9 = vcmp.lt.f32.partialorder %v966_v39, 0.0004427343 }
 0x26d   :  { %v950_v58 = vsel %vm1838_vm7, %v947_v49, %v944_v38  ;;  %v1017_v59 = vadd.f32 %v977_v43, %v905_v22  ;;  %v936_v56 = vmul.f32 1.442695, %v923_v52  ;;  %v906_v37 = vmax.f32 %v1817_v62, 0.0 }
 0x26e   :  { %v1432_v41 = vpop.eup %1431  ;;  %v874_v47 = vpop.f32.mrf.mxu2  ;;  %v938_v4 = vmul.f32 1.442695, %v924_v57  ;;  %v1014_v5 = vadd.f32 %v950_v58, %v902_v61  ;;  %v907_v46 = vmax.f32 %v1833_v34, 0.0  ;;  %v908_v62 = vmax.f32 %v1835_v35, 0.0 }
 0x26f   :  { %v1434_v48 = vpop.eup %1433  ;;  %v953_v50 = vmul.f32 0.6931472, %v1432_v41  ;;  %v887_v53 = vpop.f32.mrf.mxu3  ;;  %v1032_v6 = vrot.slane %v1017_v59, 2  ;;  %1439 = vpow2.f32 %v936_v56 }
 0x270   :  { %v962_v54 = vmul.f32 0.6931472, %v1434_v48  ;;  %v1436_v44 = vpop.eup %1435  ;;  %1441 = vpow2.f32 %v938_v4 }
 0x271   :  { %v959_v60 = vsel %vm958_vm8, %v956_v51, %v953_v50  ;;  %v1438_v2 = vpop.eup %1437  ;;  %v1005_v8 = vadd.f32 1.0, %v1436_v44  ;;  %v1008_v14 = vmul.f32 -0.5, %v1436_v44  ;;  %v1011_v24 = vand.u32 2147483647, %v1436_v44 }
 0x272   :  { %v1015_v63 = vadd.f32 %v959_v60, %v903_v28  ;;  %v968_v1 = vsel %vm967_vm9, %v965_v55, %v962_v54  ;;  %v978_v10 = vadd.f32 1.0, %v1438_v2  ;;  %v981_v17 = vmul.f32 -0.5, %v1438_v2 }
 0x273   :  { %v1016_v3 = vadd.f32 %v968_v1, %v904_v45  ;;  %1443 = vlog2.f32 %v1005_v8  ;;  %v1009_v21 = vadd.f32 1.0, %v1008_v14  ;;  %v984_v28 = vand.u32 2147483647, %v1438_v2 }
 0x274   :  { %v1030_v7 = vrot.slane %v1015_v63, 6  ;;  %1445 = vlog2.f32 %v978_v10  ;;  %v982_v25 = vadd.f32 1.0, %v981_v17  ;;  %vm1012_vm12 = vcmp.lt.f32.partialorder %v1011_v24, 0.0004427343 }
 0x275   :  { %v1031_v9 = vrot.slane %v1016_v3, 4  ;;  %v1440_v13 = vpop.eup %1439  ;;  %v1010_v33 = vmul.f32 %v1436_v44, %v1009_v21  ;;  %vm985_vm13 = vcmp.lt.f32.partialorder %v984_v28, 0.0004427343  ;;  %v909_v45 = vmax.f32 %v1819_v0, 0.0 }
 0x276   :  { %v1036_v11 = vsel %vm697_vm1, %v1014_v5, %v1030_v7  ;;  %v987_v15 = vadd.f32 1.0, %v1440_v13  ;;  %v1442_v16 = vpop.eup %1441  ;;  %v990_v18 = vmul.f32 -0.5, %v1440_v13  ;;  %v993_v29 = vand.u32 2147483647, %v1440_v13 }
 0x277   :  { %v1038_v30 = vsel %vm1037_vm10, %v1031_v9, %v1032_v6  ;;  %v996_v20 = vadd.f32 1.0, %v1442_v16  ;;  %v999_v22 = vmul.f32 -0.5, %v1442_v16  ;;  %v1002_v38 = vand.u32 2147483647, %v1442_v16 }
 0x278   :  { %v1040_v12 = vsel %vm1039_vm11, %v1036_v11, %v1038_v30  ;;  %1447 = vlog2.f32 %v987_v15  ;;  %v991_v26 = vadd.f32 1.0, %v990_v18  ;;  %v983_v39 = vmul.f32 %v1438_v2, %v982_v25 }
 0x279   :  { %1046 = vst [vmem:[#allocation2] sm:$0xff] %v1040_v12  ;;  %v1444_v19 = vpop.eup %1443  ;;  %1449 = vlog2.f32 %v996_v20  ;;  %v1000_v36 = vadd.f32 1.0, %v999_v22  ;;  %vm994_vm14 = vcmp.lt.f32.partialorder %v993_v29, 0.0004427343  ;;  %vm1003_vm15 = vcmp.lt.f32.partialorder %v1002_v38, 0.0004427343 }
 0x27a   :  { %v1446_v23 = vpop.eup %1445  ;;  %v1007_v27 = vmul.f32 0.6931472, %v1444_v19  ;;  %v992_v42 = vmul.f32 %v1440_v13, %v991_v26 }
 0x27b   :  { %v980_v31 = vmul.f32 0.6931472, %v1446_v23  ;;  %v1001_v50 = vmul.f32 %v1442_v16, %v1000_v36 }
 0x27c   :  { %v1013_v40 = vsel %vm1012_vm12, %v1010_v33, %v1007_v27 }
 0x27d   :  { %v986_v47 = vsel %vm985_vm13, %v983_v39, %v980_v31  ;;  %v1021_v51 = vadd.f32 %v1013_v40, %v909_v45 }
 0x27e   :  { %v1448_v32 = vpop.eup %1447  ;;  %v1018_v54 = vadd.f32 %v986_v47, %v906_v37 }
 0x27f   :  { %v989_v41 = vmul.f32 0.6931472, %v1448_v32  ;;  %v1450_v43 = vpop.eup %1449  ;;  %v1035_v0 = vrot.slane %v1021_v51, 2 }
 0x280   :  { %v998_v49 = vmul.f32 0.6931472, %v1450_v43 }
 0x281   :  { %v995_v48 = vsel %vm994_vm14, %v992_v42, %v989_v41 }
 0x282   :  { %v1019_v52 = vadd.f32 %v995_v48, %v907_v46  ;;  %v1004_v53 = vsel %vm1003_vm15, %v1001_v50, %v998_v49 }
 0x283   :  { %v1020_v57 = vadd.f32 %v1004_v53, %v908_v62 }
 0x284   :  { %v1033_v55 = vrot.slane %v1019_v52, 6 }
 0x285   :  { %v1034_v34 = vrot.slane %v1020_v57, 4 }
 0x286   :  { %v1041_v58 = vsel %vm697_vm1, %v1018_v54, %v1033_v55 }
 0x287   :  { %v1042_v59 = vsel %vm1037_vm10, %v1034_v34, %v1035_v0 }
 0x288   :  { %v1043_v35 = vsel %vm1039_vm11, %v1041_v58, %v1042_v59 }
 0x289   :  { %1047 = vst [vmem:[#allocation2 + $0x8] sm:$0xff] %v1043_v35 }
 0x28a   :  { %1060 = dma.vmem_to_hbm [thread:$0]  %s1056_s9, 256, %s1058_s10, [#allocation3]  }
 0x28b   :  { %1499 = dma.done.wait [#allocation3], 256  }
 0x28c   :  { %1500 = vsyncadd [#allocation3], 4294967040 }
 0x28d   :  { %1501 = dma.done.wait [#allocation5], 32  }
 0x28e   :  { %1502 = vsyncadd [#allocation5], 4294967264 }
 0x28f   :  { %1080 = vsyncpa [#allocation3], 1 }
 0x290   :  { %1081 = vsyncpa [#allocation5], 1 }

</bundles_post_ra>
